<compile_context>
chip_gen: v6e
topology: v6e:2x2x1
jax: 0.10.0
libtpu: 0.0.40
codegen_flags: <defaults>
</compile_context>

<pallas_src>
import functools

import jax
import jax.numpy as jnp
from jax import lax
from jax.experimental import pallas as pl
from jax.experimental.pallas import tpu as pltpu


def bottleneck_kernel(
    x_ref,      # (Cin, L)           f32  lane-dense input slab (L = B_blk*H*W)
    mask_ref,   # (9, L)             f32  per-tap 0/1 validity masks (grid-invariant)
    w1_ref,     # (width, Cin)       bf16 conv1 weight, BN1 scale folded
    b1_ref,     # (width, 1)         f32  BN1 bias
    w2_ref,     # (9, width, width)  bf16 conv2 per-tap weights, BN2 folded
    b2_ref,     # (width, 1)         f32
    w3_ref,     # (Cout, width)      bf16 conv3 weight, BN3 folded
    b3_ref,     # (Cout, 1)          f32
    out_ref,    # (Cout, L)
    *, W,
):
    x = x_ref[...]                                     # (Cin, L) f32
    L = x.shape[1]

    # --- conv1 (1x1) + folded BN1 + ReLU (bf16 MXU, f32 epilogue) -----------
    o1 = jnp.dot(w1_ref[...], x.astype(jnp.bfloat16),
                 preferred_element_type=jnp.float32)
    o1 = jnp.maximum(o1 + b1_ref[...], 0.0)            # (width, L) f32

    # --- conv2 (3x3, stride 1, pad 1): nine accumulating matmuls on rolled
    #     views of o1.  pltpu.roll(o1, (-d) % L) gives tap[p] = o1[p + d] with
    #     d = dy*W + dx; every position where that read would cross a row /
    #     image / slab boundary is zeroed by the precomputed mask row.
    #     (Narrow widths under-fill the MXU; that is accepted per review.)
    acc = None
    t = 0
    for dy in (-1, 0, 1):
        for dx in (-1, 0, 1):
            d = dy * W + dx
            if d == 0:
                tap = o1                                # center tap: no shift/mask
            else:
                tap = pltpu.roll(o1, shift=(-d) % L, axis=1)
                tap = tap * mask_ref[t:t + 1, :]        # f32 0/1 mask, broadcast
            contrib = jnp.dot(w2_ref[t], tap.astype(jnp.bfloat16),
                              preferred_element_type=jnp.float32)
            acc = contrib if acc is None else acc + contrib
            t += 1
    o2 = jnp.maximum(acc + b2_ref[...], 0.0)            # (width, L) f32

    # --- conv3 (1x1) + folded BN3 + identity residual + ReLU -----------------
    o3 = jnp.dot(w3_ref[...], o2.astype(jnp.bfloat16),
                 preferred_element_type=jnp.float32)
    o3 = o3 + b3_ref[...]                               # (Cout, L) f32
    out_ref[...] = jnp.maximum(o3 + x, 0.0).astype(out_ref.dtype)


def build_conv2_masks(H, W, batch_block):
    """(9, batch_block*H*W) 0/1 masks: tap (dy, dx) is valid iff (y+dy, x+dx)
    stays inside the same image (covers conv zero-padding and the image
    boundaries inside a multi-image lane slab).  Host-side; hoisted out of the
    kernel body."""
    HW = H * W
    pos = jnp.arange(batch_block * HW, dtype=jnp.int32)
    xc = pos % W
    yc = (pos // W) % H
    rows = []
    for dy in (-1, 0, 1):
        for dx in (-1, 0, 1):
            valid = ((xc + dx >= 0) & (xc + dx < W) &
                     (yc + dy >= 0) & (yc + dy < H))
            rows.append(valid.astype(jnp.float32))
    return jnp.stack(rows, axis=0)


def bottleneck_pallas(x_cm, params, *, H, W, batch_block):
    """x_cm: (Cin, N*H*W) channel-major f32; returns (Cout, N*H*W)."""
    w1, b1, w2, b2, w3, b3 = params
    Cin, L_total = x_cm.shape
    HW = H * W
    N = L_total // HW
    Cout = w3.shape[0]
    assert Cin == Cout, "identity residual requires inplanes == planes*expansion"
    assert L_total == N * HW
    assert N % batch_block == 0, "batch must be divisible by batch_block"
    L_blk = batch_block * HW
    assert L_blk % 128 == 0, "lane block must be a multiple of 128"

    masks = build_conv2_masks(H, W, batch_block)

    def const_spec(arr):
        nd = arr.ndim
        return pl.BlockSpec(arr.shape, lambda n, _nd=nd: (0,) * _nd)

    kernel = functools.partial(bottleneck_kernel, W=W)

    return pl.pallas_call(
        kernel,
        out_shape=jax.ShapeDtypeStruct((Cout, L_total), x_cm.dtype),
        grid_spec=pltpu.PrefetchScalarGridSpec(
            num_scalar_prefetch=0,
            grid=(N // batch_block,),
            in_specs=[
                pl.BlockSpec((Cin, L_blk), lambda n: (0, n)),
                const_spec(masks),
                const_spec(w1), const_spec(b1),
                const_spec(w2), const_spec(b2),
                const_spec(w3), const_spec(b3),
            ],
            out_specs=pl.BlockSpec((Cout, L_blk), lambda n: (0, n)),
        ),
        compiler_params=pltpu.CompilerParams(
            dimension_semantics=("parallel",),
        ),
    )(x_cm, masks, w1, b1, w2, b2, w3, b3)


def fold_bn(gamma, beta, mean, var, eps=1e-5):
    scale = gamma / jnp.sqrt(var + eps)
    bias = beta - mean * scale
    return scale, bias


def _pad_axis(a, axis, new_size):
    pad = [(0, 0)] * a.ndim
    pad[axis] = (0, new_size - a.shape[axis])
    return jnp.pad(a, pad)


def prepare_params(w1_oihw, w2_oihw, w3_oihw, bn1, bn2, bn3):
    """Fold eval-mode BN into the conv weights, pack conv2 as 9 per-tap
    (out, in) matrices in (ky-major, kx-minor) order, zero-pad the bottleneck
    width up to a multiple of 8 sublanes (exact), cast MXU operands to bf16."""
    width = w1_oihw.shape[0]
    s1, bb1 = fold_bn(*bn1)
    s2, bb2 = fold_bn(*bn2)
    s3, bb3 = fold_bn(*bn3)

    w1 = w1_oihw[:, :, 0, 0] * s1[:, None]                              # (width, Cin)
    w2 = jnp.transpose(w2_oihw, (2, 3, 0, 1)).reshape(9, width, width)  # (tap, o, i)
    w2 = w2 * s2[None, :, None]
    w3 = w3_oihw[:, :, 0, 0] * s3[:, None]                              # (Cout, width)
    b1, b2, b3 = bb1[:, None], bb2[:, None], bb3[:, None]

    width_p = max(8, -(-width // 8) * 8)        # sublane-align the width axis
    w1 = _pad_axis(w1, 0, width_p)
    b1 = _pad_axis(b1, 0, width_p)
    w2 = _pad_axis(_pad_axis(w2, 1, width_p), 2, width_p)
    b2 = _pad_axis(b2, 0, width_p)
    w3 = _pad_axis(w3, 1, width_p)

    return (w1.astype(jnp.bfloat16), b1.astype(jnp.float32),
            w2.astype(jnp.bfloat16), b2.astype(jnp.float32),
            w3.astype(jnp.bfloat16), b3.astype(jnp.float32))


def reference_forward(x_nchw, p):
    """Pure-JAX reference matching the PyTorch module (eval-mode BN)."""
    dn = ("NCHW", "OIHW", "NCHW")

    def conv(x, w, pad):
        return lax.conv_general_dilated(
            x, w, window_strides=(1, 1),
            padding=[(pad, pad), (pad, pad)], dimension_numbers=dn)

    def bn(x, gamma, beta, mean, var, eps=1e-5):
        s = gamma / jnp.sqrt(var + eps)
        b = beta - mean * s
        return x * s[None, :, None, None] + b[None, :, None, None]

    identity = x_nchw
    out = jax.nn.relu(bn(conv(x_nchw, p["w1"], 0), *p["bn1"]))
    out = jax.nn.relu(bn(conv(out, p["w2"], 1), *p["bn2"]))
    out = bn(conv(out, p["w3"], 0), *p["bn3"])
    return jax.nn.relu(out + identity)


if __name__ == "__main__":
    # Module config: planes=4, base_width=64, groups=1 => width=4,
    # inplanes = planes * expansion = 16 (required by the identity residual
    # since downsample=None), stride=1, dilation=1.
    N, H, W = 4, 16, 16
    planes = 4
    inplanes = planes * 4        # 16
    width = planes               # int(planes * (64/64)) * 1 = 4
    out_ch = planes * 4          # 16
    B_blk = 2                    # images per grid step -> grid=(2,), even (v7x)

    key = jax.random.PRNGKey(0)
    keys = jax.random.split(key, 8)

    x_nchw = jax.random.normal(keys[0], (N, inplanes, H, W), jnp.float32)

    w1_oihw = jax.random.normal(keys[1], (width, inplanes, 1, 1), jnp.float32) * 0.1
    w2_oihw = jax.random.normal(keys[2], (width, width, 3, 3), jnp.float32) * 0.1
    w3_oihw = jax.random.normal(keys[3], (out_ch, width, 1, 1), jnp.float32) * 0.1

    def bn_params(k, c):
        k1, k2, k3, k4 = jax.random.split(k, 4)
        gamma = 1.0 + 0.1 * jax.random.normal(k1, (c,), jnp.float32)
        beta = 0.1 * jax.random.normal(k2, (c,), jnp.float32)
        mean = 0.1 * jax.random.normal(k3, (c,), jnp.float32)
        var = 1.0 + 0.1 * jax.random.uniform(k4, (c,), jnp.float32)
        return gamma, beta, mean, var

    bn1 = bn_params(keys[4], width)
    bn2 = bn_params(keys[5], width)
    bn3 = bn_params(keys[6], out_ch)

    params = prepare_params(w1_oihw, w2_oihw, w3_oihw, bn1, bn2, bn3)

    # NCHW -> channel-major (C, N*H*W): layout plumbing outside the kernel.
    x_cm = jnp.transpose(x_nchw, (1, 0, 2, 3)).reshape(inplanes, N * H * W)

    out_cm = bottleneck_pallas(x_cm, params, H=H, W=W, batch_block=B_blk)
    out_nchw = jnp.transpose(out_cm.reshape(out_ch, N, H, W), (1, 0, 2, 3))
    jax.block_until_ready(out_nchw)

    # Verify against a pure-JAX reference of the PyTorch forward.
    ref = reference_forward(
        x_nchw,
        {"w1": w1_oihw, "w2": w2_oihw, "w3": w3_oihw,
         "bn1": bn1, "bn2": bn2, "bn3": bn3})
    # bf16 MXU operands vs f32 reference -> relaxed tolerance.
    max_err = float(jnp.max(jnp.abs(out_nchw - ref)))
    assert jnp.allclose(out_nchw, ref, atol=3e-2, rtol=3e-2), max_err

    print("KERNEL_OK")
</pallas_src>

<mosaic_0001>
module attributes {stable_mosaic.version = 11 : i64} {
  func.func @bottleneck_kernel(%arg0: i32, %arg1: memref<16x512xf32, #tpu.memory_space<vmem>>, %arg2: memref<9x512xf32, #tpu.memory_space<vmem>>, %arg3: memref<8x16xbf16, #tpu.memory_space<vmem>>, %arg4: memref<8x1xf32, #tpu.memory_space<vmem>>, %arg5: memref<9x8x8xbf16, #tpu.memory_space<vmem>>, %arg6: memref<8x1xf32, #tpu.memory_space<vmem>>, %arg7: memref<16x8xbf16, #tpu.memory_space<vmem>>, %arg8: memref<16x1xf32, #tpu.memory_space<vmem>>, %arg9: memref<16x512xf32, #tpu.memory_space<vmem>>) attributes {dimension_semantics = [#tpu.dimension_semantics<parallel>], iteration_bounds = array<i64: 2>, scalar_prefetch = 0 : i64, scratch_operands = 0 : i64, tpu.core_type = #tpu.core_type<tc>, window_params = [{transform_indices = @transform_0, window_bounds = array<i64: 16, 512>}, {pipeline_mode = #tpu.pipeline_mode<synchronous>, transform_indices = @transform_1, window_bounds = array<i64: 9, 512>}, {pipeline_mode = #tpu.pipeline_mode<synchronous>, transform_indices = @transform_2, window_bounds = array<i64: 8, 16>}, {pipeline_mode = #tpu.pipeline_mode<synchronous>, transform_indices = @transform_3, window_bounds = array<i64: 8, 1>}, {pipeline_mode = #tpu.pipeline_mode<synchronous>, transform_indices = @transform_4, window_bounds = array<i64: 9, 8, 8>}, {pipeline_mode = #tpu.pipeline_mode<synchronous>, transform_indices = @transform_5, window_bounds = array<i64: 8, 1>}, {pipeline_mode = #tpu.pipeline_mode<synchronous>, transform_indices = @transform_6, window_bounds = array<i64: 16, 8>}, {pipeline_mode = #tpu.pipeline_mode<synchronous>, transform_indices = @transform_7, window_bounds = array<i64: 16, 1>}, {transform_indices = @transform_8, window_bounds = array<i64: 16, 512>}]} {
    %c0 = arith.constant 0 : index
    %c0_0 = arith.constant 0 : index
    %0 = vector.load %arg1[%c0, %c0_0] : memref<16x512xf32, #tpu.memory_space<vmem>>, vector<16x512xf32>
    %c0_1 = arith.constant 0 : index
    %c0_2 = arith.constant 0 : index
    %1 = vector.load %arg3[%c0_1, %c0_2] : memref<8x16xbf16, #tpu.memory_space<vmem>>, vector<8x16xbf16>
    %2 = arith.truncf %0 : vector<16x512xf32> to vector<16x512xbf16>
    %cst = arith.constant dense<0.000000e+00> : vector<8x512xf32>
    %3 = tpu.matmul %1, %2, %cst {dimension_numbers = #tpu.dot_dimension_numbers<[1], [0], [0], [1], [0, 0, 1, 1], [], []>} : vector<8x16xbf16>, vector<16x512xbf16>, vector<8x512xf32> -> vector<8x512xf32>
    %c0_3 = arith.constant 0 : index
    %c0_4 = arith.constant 0 : index
    %4 = vector.load %arg4[%c0_3, %c0_4] : memref<8x1xf32, #tpu.memory_space<vmem>>, vector<8x1xf32>
    %5 = vector.broadcast %4 : vector<8x1xf32> to vector<8x512xf32>
    %6 = arith.addf %3, %5 : vector<8x512xf32>
    %cst_5 = arith.constant 0.000000e+00 : f32
    %7 = vector.broadcast %cst_5 : f32 to vector<8x512xf32>
    %8 = arith.maximumf %6, %7 : vector<8x512xf32>
    %c17_i32 = arith.constant 17 : i32
    %9 = tpu.dynamic_rotate %8 by %c17_i32 dim 1 : vector<8x512xf32>, i32 -> vector<8x512xf32>
    %c0_6 = arith.constant 0 : index
    %c0_7 = arith.constant 0 : index
    %10 = vector.load %arg2[%c0_6, %c0_7] : memref<9x512xf32, #tpu.memory_space<vmem>>, vector<1x512xf32>
    %11 = vector.broadcast %10 : vector<1x512xf32> to vector<8x512xf32>
    %12 = arith.mulf %9, %11 : vector<8x512xf32>
    %c0_8 = arith.constant 0 : index
    %c0_9 = arith.constant 0 : index
    %c0_10 = arith.constant 0 : index
    %13 = vector.load %arg5[%c0_8, %c0_9, %c0_10] : memref<9x8x8xbf16, #tpu.memory_space<vmem>>, vector<1x8x8xbf16>
    %14 = vector.shape_cast %13 : vector<1x8x8xbf16> to vector<8x8xbf16>
    %15 = arith.truncf %12 : vector<8x512xf32> to vector<8x512xbf16>
    %cst_11 = arith.constant dense<0.000000e+00> : vector<8x512xf32>
    %16 = tpu.matmul %14, %15, %cst_11 {dimension_numbers = #tpu.dot_dimension_numbers<[1], [0], [0], [1], [0, 0, 1, 1], [], []>} : vector<8x8xbf16>, vector<8x512xbf16>, vector<8x512xf32> -> vector<8x512xf32>
    %c16_i32 = arith.constant 16 : i32
    %17 = tpu.dynamic_rotate %8 by %c16_i32 dim 1 : vector<8x512xf32>, i32 -> vector<8x512xf32>
    %c1 = arith.constant 1 : index
    %c0_12 = arith.constant 0 : index
    %18 = vector.load %arg2[%c1, %c0_12] : memref<9x512xf32, #tpu.memory_space<vmem>>, vector<1x512xf32>
    %19 = vector.broadcast %18 : vector<1x512xf32> to vector<8x512xf32>
    %20 = arith.mulf %17, %19 : vector<8x512xf32>
    %c1_13 = arith.constant 1 : index
    %c0_14 = arith.constant 0 : index
    %c0_15 = arith.constant 0 : index
    %21 = vector.load %arg5[%c1_13, %c0_14, %c0_15] : memref<9x8x8xbf16, #tpu.memory_space<vmem>>, vector<1x8x8xbf16>
    %22 = vector.shape_cast %21 : vector<1x8x8xbf16> to vector<8x8xbf16>
    %23 = arith.truncf %20 : vector<8x512xf32> to vector<8x512xbf16>
    %cst_16 = arith.constant dense<0.000000e+00> : vector<8x512xf32>
    %24 = tpu.matmul %22, %23, %cst_16 {dimension_numbers = #tpu.dot_dimension_numbers<[1], [0], [0], [1], [0, 0, 1, 1], [], []>} : vector<8x8xbf16>, vector<8x512xbf16>, vector<8x512xf32> -> vector<8x512xf32>
    %25 = arith.addf %16, %24 : vector<8x512xf32>
    %c15_i32 = arith.constant 15 : i32
    %26 = tpu.dynamic_rotate %8 by %c15_i32 dim 1 : vector<8x512xf32>, i32 -> vector<8x512xf32>
    %c2 = arith.constant 2 : index
    %c0_17 = arith.constant 0 : index
    %27 = vector.load %arg2[%c2, %c0_17] : memref<9x512xf32, #tpu.memory_space<vmem>>, vector<1x512xf32>
    %28 = vector.broadcast %27 : vector<1x512xf32> to vector<8x512xf32>
    %29 = arith.mulf %26, %28 : vector<8x512xf32>
    %c2_18 = arith.constant 2 : index
    %c0_19 = arith.constant 0 : index
    %c0_20 = arith.constant 0 : index
    %30 = vector.load %arg5[%c2_18, %c0_19, %c0_20] : memref<9x8x8xbf16, #tpu.memory_space<vmem>>, vector<1x8x8xbf16>
    %31 = vector.shape_cast %30 : vector<1x8x8xbf16> to vector<8x8xbf16>
    %32 = arith.truncf %29 : vector<8x512xf32> to vector<8x512xbf16>
    %cst_21 = arith.constant dense<0.000000e+00> : vector<8x512xf32>
    %33 = tpu.matmul %31, %32, %cst_21 {dimension_numbers = #tpu.dot_dimension_numbers<[1], [0], [0], [1], [0, 0, 1, 1], [], []>} : vector<8x8xbf16>, vector<8x512xbf16>, vector<8x512xf32> -> vector<8x512xf32>
    %34 = arith.addf %25, %33 : vector<8x512xf32>
    %c1_i32 = arith.constant 1 : i32
    %35 = tpu.dynamic_rotate %8 by %c1_i32 dim 1 : vector<8x512xf32>, i32 -> vector<8x512xf32>
    %c3 = arith.constant 3 : index
    %c0_22 = arith.constant 0 : index
    %36 = vector.load %arg2[%c3, %c0_22] : memref<9x512xf32, #tpu.memory_space<vmem>>, vector<1x512xf32>
    %37 = vector.broadcast %36 : vector<1x512xf32> to vector<8x512xf32>
    %38 = arith.mulf %35, %37 : vector<8x512xf32>
    %c3_23 = arith.constant 3 : index
    %c0_24 = arith.constant 0 : index
    %c0_25 = arith.constant 0 : index
    %39 = vector.load %arg5[%c3_23, %c0_24, %c0_25] : memref<9x8x8xbf16, #tpu.memory_space<vmem>>, vector<1x8x8xbf16>
    %40 = vector.shape_cast %39 : vector<1x8x8xbf16> to vector<8x8xbf16>
    %41 = arith.truncf %38 : vector<8x512xf32> to vector<8x512xbf16>
    %cst_26 = arith.constant dense<0.000000e+00> : vector<8x512xf32>
    %42 = tpu.matmul %40, %41, %cst_26 {dimension_numbers = #tpu.dot_dimension_numbers<[1], [0], [0], [1], [0, 0, 1, 1], [], []>} : vector<8x8xbf16>, vector<8x512xbf16>, vector<8x512xf32> -> vector<8x512xf32>
    %43 = arith.addf %34, %42 : vector<8x512xf32>
    %c4 = arith.constant 4 : index
    %c0_27 = arith.constant 0 : index
    %c0_28 = arith.constant 0 : index
    %44 = vector.load %arg5[%c4, %c0_27, %c0_28] : memref<9x8x8xbf16, #tpu.memory_space<vmem>>, vector<1x8x8xbf16>
    %45 = vector.shape_cast %44 : vector<1x8x8xbf16> to vector<8x8xbf16>
    %46 = arith.truncf %8 : vector<8x512xf32> to vector<8x512xbf16>
    %cst_29 = arith.constant dense<0.000000e+00> : vector<8x512xf32>
    %47 = tpu.matmul %45, %46, %cst_29 {dimension_numbers = #tpu.dot_dimension_numbers<[1], [0], [0], [1], [0, 0, 1, 1], [], []>} : vector<8x8xbf16>, vector<8x512xbf16>, vector<8x512xf32> -> vector<8x512xf32>
    %48 = arith.addf %43, %47 : vector<8x512xf32>
    %c511_i32 = arith.constant 511 : i32
    %49 = tpu.dynamic_rotate %8 by %c511_i32 dim 1 : vector<8x512xf32>, i32 -> vector<8x512xf32>
    %c5 = arith.constant 5 : index
    %c0_30 = arith.constant 0 : index
    %50 = vector.load %arg2[%c5, %c0_30] : memref<9x512xf32, #tpu.memory_space<vmem>>, vector<1x512xf32>
    %51 = vector.broadcast %50 : vector<1x512xf32> to vector<8x512xf32>
    %52 = arith.mulf %49, %51 : vector<8x512xf32>
    %c5_31 = arith.constant 5 : index
    %c0_32 = arith.constant 0 : index
    %c0_33 = arith.constant 0 : index
    %53 = vector.load %arg5[%c5_31, %c0_32, %c0_33] : memref<9x8x8xbf16, #tpu.memory_space<vmem>>, vector<1x8x8xbf16>
    %54 = vector.shape_cast %53 : vector<1x8x8xbf16> to vector<8x8xbf16>
    %55 = arith.truncf %52 : vector<8x512xf32> to vector<8x512xbf16>
    %cst_34 = arith.constant dense<0.000000e+00> : vector<8x512xf32>
    %56 = tpu.matmul %54, %55, %cst_34 {dimension_numbers = #tpu.dot_dimension_numbers<[1], [0], [0], [1], [0, 0, 1, 1], [], []>} : vector<8x8xbf16>, vector<8x512xbf16>, vector<8x512xf32> -> vector<8x512xf32>
    %57 = arith.addf %48, %56 : vector<8x512xf32>
    %c497_i32 = arith.constant 497 : i32
    %58 = tpu.dynamic_rotate %8 by %c497_i32 dim 1 : vector<8x512xf32>, i32 -> vector<8x512xf32>
    %c6 = arith.constant 6 : index
    %c0_35 = arith.constant 0 : index
    %59 = vector.load %arg2[%c6, %c0_35] : memref<9x512xf32, #tpu.memory_space<vmem>>, vector<1x512xf32>
    %60 = vector.broadcast %59 : vector<1x512xf32> to vector<8x512xf32>
    %61 = arith.mulf %58, %60 : vector<8x512xf32>
    %c6_36 = arith.constant 6 : index
    %c0_37 = arith.constant 0 : index
    %c0_38 = arith.constant 0 : index
    %62 = vector.load %arg5[%c6_36, %c0_37, %c0_38] : memref<9x8x8xbf16, #tpu.memory_space<vmem>>, vector<1x8x8xbf16>
    %63 = vector.shape_cast %62 : vector<1x8x8xbf16> to vector<8x8xbf16>
    %64 = arith.truncf %61 : vector<8x512xf32> to vector<8x512xbf16>
    %cst_39 = arith.constant dense<0.000000e+00> : vector<8x512xf32>
    %65 = tpu.matmul %63, %64, %cst_39 {dimension_numbers = #tpu.dot_dimension_numbers<[1], [0], [0], [1], [0, 0, 1, 1], [], []>} : vector<8x8xbf16>, vector<8x512xbf16>, vector<8x512xf32> -> vector<8x512xf32>
    %66 = arith.addf %57, %65 : vector<8x512xf32>
    %c496_i32 = arith.constant 496 : i32
    %67 = tpu.dynamic_rotate %8 by %c496_i32 dim 1 : vector<8x512xf32>, i32 -> vector<8x512xf32>
    %c7 = arith.constant 7 : index
    %c0_40 = arith.constant 0 : index
    %68 = vector.load %arg2[%c7, %c0_40] : memref<9x512xf32, #tpu.memory_space<vmem>>, vector<1x512xf32>
    %69 = vector.broadcast %68 : vector<1x512xf32> to vector<8x512xf32>
    %70 = arith.mulf %67, %69 : vector<8x512xf32>
    %c7_41 = arith.constant 7 : index
    %c0_42 = arith.constant 0 : index
    %c0_43 = arith.constant 0 : index
    %71 = vector.load %arg5[%c7_41, %c0_42, %c0_43] : memref<9x8x8xbf16, #tpu.memory_space<vmem>>, vector<1x8x8xbf16>
    %72 = vector.shape_cast %71 : vector<1x8x8xbf16> to vector<8x8xbf16>
    %73 = arith.truncf %70 : vector<8x512xf32> to vector<8x512xbf16>
    %cst_44 = arith.constant dense<0.000000e+00> : vector<8x512xf32>
    %74 = tpu.matmul %72, %73, %cst_44 {dimension_numbers = #tpu.dot_dimension_numbers<[1], [0], [0], [1], [0, 0, 1, 1], [], []>} : vector<8x8xbf16>, vector<8x512xbf16>, vector<8x512xf32> -> vector<8x512xf32>
    %75 = arith.addf %66, %74 : vector<8x512xf32>
    %c495_i32 = arith.constant 495 : i32
    %76 = tpu.dynamic_rotate %8 by %c495_i32 dim 1 : vector<8x512xf32>, i32 -> vector<8x512xf32>
    %c8 = arith.constant 8 : index
    %c0_45 = arith.constant 0 : index
    %77 = vector.load %arg2[%c8, %c0_45] : memref<9x512xf32, #tpu.memory_space<vmem>>, vector<1x512xf32>
    %78 = vector.broadcast %77 : vector<1x512xf32> to vector<8x512xf32>
    %79 = arith.mulf %76, %78 : vector<8x512xf32>
    %c8_46 = arith.constant 8 : index
    %c0_47 = arith.constant 0 : index
    %c0_48 = arith.constant 0 : index
    %80 = vector.load %arg5[%c8_46, %c0_47, %c0_48] : memref<9x8x8xbf16, #tpu.memory_space<vmem>>, vector<1x8x8xbf16>
    %81 = vector.shape_cast %80 : vector<1x8x8xbf16> to vector<8x8xbf16>
    %82 = arith.truncf %79 : vector<8x512xf32> to vector<8x512xbf16>
    %cst_49 = arith.constant dense<0.000000e+00> : vector<8x512xf32>
    %83 = tpu.matmul %81, %82, %cst_49 {dimension_numbers = #tpu.dot_dimension_numbers<[1], [0], [0], [1], [0, 0, 1, 1], [], []>} : vector<8x8xbf16>, vector<8x512xbf16>, vector<8x512xf32> -> vector<8x512xf32>
    %84 = arith.addf %75, %83 : vector<8x512xf32>
    %c0_50 = arith.constant 0 : index
    %c0_51 = arith.constant 0 : index
    %85 = vector.load %arg6[%c0_50, %c0_51] : memref<8x1xf32, #tpu.memory_space<vmem>>, vector<8x1xf32>
    %86 = vector.broadcast %85 : vector<8x1xf32> to vector<8x512xf32>
    %87 = arith.addf %84, %86 : vector<8x512xf32>
    %cst_52 = arith.constant 0.000000e+00 : f32
    %88 = vector.broadcast %cst_52 : f32 to vector<8x512xf32>
    %89 = arith.maximumf %87, %88 : vector<8x512xf32>
    %c0_53 = arith.constant 0 : index
    %c0_54 = arith.constant 0 : index
    %90 = vector.load %arg7[%c0_53, %c0_54] : memref<16x8xbf16, #tpu.memory_space<vmem>>, vector<16x8xbf16>
    %91 = arith.truncf %89 : vector<8x512xf32> to vector<8x512xbf16>
    %cst_55 = arith.constant dense<0.000000e+00> : vector<16x512xf32>
    %92 = tpu.matmul %90, %91, %cst_55 {dimension_numbers = #tpu.dot_dimension_numbers<[1], [0], [0], [1], [0, 0, 1, 1], [], []>} : vector<16x8xbf16>, vector<8x512xbf16>, vector<16x512xf32> -> vector<16x512xf32>
    %c0_56 = arith.constant 0 : index
    %c0_57 = arith.constant 0 : index
    %93 = vector.load %arg8[%c0_56, %c0_57] : memref<16x1xf32, #tpu.memory_space<vmem>>, vector<16x1xf32>
    %94 = vector.broadcast %93 : vector<16x1xf32> to vector<16x512xf32>
    %95 = arith.addf %92, %94 : vector<16x512xf32>
    %96 = arith.addf %95, %0 : vector<16x512xf32>
    %cst_58 = arith.constant 0.000000e+00 : f32
    %97 = vector.broadcast %cst_58 : f32 to vector<16x512xf32>
    %98 = arith.maximumf %96, %97 : vector<16x512xf32>
    %c0_59 = arith.constant 0 : index
    %c0_60 = arith.constant 0 : index
    %99 = vector.load %arg9[%c0_59, %c0_60] : memref<16x512xf32, #tpu.memory_space<vmem>>, vector<16x512xf32>
    tpu.vector_store %arg9[%c0_59, %c0_60], %98 {strides = array<i32>} : memref<16x512xf32, #tpu.memory_space<vmem>>, vector<16x512xf32>,
    return
  }
  func.func @transform_0(%arg0: i32) -> (i32, i32) {
    %c0_i32 = arith.constant 0 : i32
    %c0_i32_0 = arith.constant 0 : i32
    return %c0_i32, %arg0 : i32, i32
  }
  func.func @transform_1(%arg0: i32) -> (i32, i32) {
    %c0_i32 = arith.constant 0 : i32
    %c0_i32_0 = arith.constant 0 : i32
    %c0_i32_1 = arith.constant 0 : i32
    return %c0_i32, %c0_i32_0 : i32, i32
  }
  func.func @transform_2(%arg0: i32) -> (i32, i32) {
    %c0_i32 = arith.constant 0 : i32
    %c0_i32_0 = arith.constant 0 : i32
    %c0_i32_1 = arith.constant 0 : i32
    return %c0_i32, %c0_i32_0 : i32, i32
  }
  func.func @transform_3(%arg0: i32) -> (i32, i32) {
    %c0_i32 = arith.constant 0 : i32
    %c0_i32_0 = arith.constant 0 : i32
    %c0_i32_1 = arith.constant 0 : i32
    return %c0_i32, %c0_i32_0 : i32, i32
  }
  func.func @transform_4(%arg0: i32) -> (i32, i32, i32) {
    %c0_i32 = arith.constant 0 : i32
    %c0_i32_0 = arith.constant 0 : i32
    %c0_i32_1 = arith.constant 0 : i32
    %c0_i32_2 = arith.constant 0 : i32
    return %c0_i32, %c0_i32_0, %c0_i32_1 : i32, i32, i32
  }
  func.func @transform_5(%arg0: i32) -> (i32, i32) {
    %c0_i32 = arith.constant 0 : i32
    %c0_i32_0 = arith.constant 0 : i32
    %c0_i32_1 = arith.constant 0 : i32
    return %c0_i32, %c0_i32_0 : i32, i32
  }
  func.func @transform_6(%arg0: i32) -> (i32, i32) {
    %c0_i32 = arith.constant 0 : i32
    %c0_i32_0 = arith.constant 0 : i32
    %c0_i32_1 = arith.constant 0 : i32
    return %c0_i32, %c0_i32_0 : i32, i32
  }
  func.func @transform_7(%arg0: i32) -> (i32, i32) {
    %c0_i32 = arith.constant 0 : i32
    %c0_i32_0 = arith.constant 0 : i32
    %c0_i32_1 = arith.constant 0 : i32
    return %c0_i32, %c0_i32_0 : i32, i32
  }
  func.func @transform_8(%arg0: i32) -> (i32, i32) {
    %c0_i32 = arith.constant 0 : i32
    %c0_i32_0 = arith.constant 0 : i32
    return %c0_i32, %arg0 : i32, i32
  }
}

</mosaic_0001>

<bundles_post_ra>
// kernel: tpu_custom_call.1
= control target key start
LH: loop header
LB: loop body
LE: loop exit
PB: predicated region body
PF: predicated region fallthrough
CT: control target
= control target key end

     0   :  { %13 = vsyncpa [#allocation3], 0  ;;  %s2764_s0 = inlined_call_operand.hbm [shape: f32[16,1024], index: 0, kind: input, shape index: {}]   ;;  %s2765_s1 = inlined_call_operand.vmem [shape: f32[9,512], index: 1, kind: input, shape index: {}]   ;;  %s2766_s2 = inlined_call_operand.vmem [shape: bf16[8,16], index: 2, kind: input, shape index: {}]   ;;  %s2767_s3 = inlined_call_operand.vmem [shape: f32[8,1], index: 3, kind: input, shape index: {}]   ;;  %s2768_s4 = inlined_call_operand.vmem [shape: bf16[9,8,8], index: 4, kind: input, shape index: {}]   ;;  %s2769_s5 = inlined_call_operand.vmem [shape: f32[8,1], index: 5, kind: input, shape index: {}]   ;;  %s2770_s6 = inlined_call_operand.vmem [shape: bf16[16,8], index: 6, kind: input, shape index: {}]   ;;  %s2771_s7 = inlined_call_operand.vmem [shape: f32[16,1], index: 7, kind: input, shape index: {}]   ;;  %s2772_s8 = inlined_call_operand.hbm [shape: f32[16,1024], index: 8, kind: output, shape index: {}]  }
   0x1   :  { %15 = vsyncpa [#allocation3 + $0x1], 0 }
   0x2   :  { %16 = vsyncpa [#allocation4], 0 }
   0x3   :  { %18 = vsyncpa [#allocation4 + $0x1], 0  ;;  %s2262_s27 = smov 0   ;;  %s2264_s28 = smov 0  }
   0x4   :  { %s2266_s29 = smov 0   ;;  %s2268_s30 = smov 0  }
   0x5 LB: > { %s2283_s9 = sadd.s32 4294967295, %s2198_s30   ;;  %s1962_s10 = sadd.s32 4294967294, %s2198_s30   ;;  %s2198_s30 = sphi %s2268_s30, %s2790_s30   ;;  %s2194_s29 = sphi %s2266_s29, %s2789_s29   ;;  %s2190_s28 = sphi %s2264_s28, %s2788_s28   ;;  %s2186_s27 = sphi %s2262_s27, %s2787_s27  }
   0x6   : > { %s2287_s11 = sadd.s32 1, %s2198_s30   ;;  %s31_s12 = sadd.s32 1, %s2194_s29 }
   0x7   : > { %s28_s13 = ssub.s32 %s2198_s30, %s2287_s11  ;;  %p38_p0 = scmp.ne.s32.totalorder %s2194_s29, %s2190_s28 }
   0x8   : > { %p29_p1 = scmp.eq.s32.totalorder %s28_s13, 0  ;;  %p39_p2 = scmp.eq.s32.totalorder %s2198_s30, 0 }
   0x9   : > { %p44_p3 = scmp.ne.s32.totalorder %s2190_s28, %s2186_s27  ;;  %p45_p4 = scmp.eq.s32.totalorder %s2283_s9, 0 }
   0xa   : > { %s2299_s14 = scalar_select %p29_p1, %s2194_s29, %s31_s12  }
   0xb   : > { %p2301_p5 = por %p39_p2, %p38_p0  ;;  %p2305_p6 = por %p45_p4, %p44_p3 }
   0xc   : > { %2775 = sst [smem:[#allocation8_spill]] %s2299_s14  ;;  %p215_p7 = scmp.eq.s32.totalorder %s2283_s9, 1 }
   0xd   : > { %s2777_s16 = scalar_select %p2305_p6, 1, 0 }
   0xe   : > { %p221_p8 = scmp.eq.s32.totalorder %s1962_s10, 1  ;;  %p2048_p10 = scmp.lt.s32.totalorder %s2198_s30, 2 }
   0xf   : > { %p2312_p11 = por %p215_p7, %p38_p0  ;;  %s262_s19 = sand.u32 1, %s2194_s29  }
  0x10   : > { %p2316_p12 = por %p221_p8, %p44_p3  ;;  %s2034_s20 = sshll.u32 %s2198_s30, 9 }
  0x11   : > { %s2778_s17 = scalar_select %p2312_p11, 1, 0 }
  0x12   : > { %s2779_s18 = scalar_select %p2316_p12, 1, 0 }
  0x13   : > { %s1965_s21 = sshll.u32 %s262_s19, 6  ;;  %s2325_s24 = scalar_lea.hbm %s2764_s0, %s2034_s20 }
  0x14   : > { %s266_s25 = scalar_lea.vmem [#allocation2], %s1965_s21  ;;  %p2329_p13 = pnand %p2048_p10, %p2301_p5 }
  0x15   : > { %s273_s26 = sshll.u32 %s266_s25, 4  ;;  %s2336_s12 = scalar_lea.sflag [#allocation3], %s262_s19  ;;  %s2333_s26 = int_to_ptr.vmem [resolvable:$true] %s273_s26 }
  0x16   : > { %s2106_s13 = scalar_lea.hbm %s2325_s24, 1024  ;;  %p2108_p2 = pneg %p2329_p13 }
  0x17   : > { %p2107_p1 = scmp.ne.s32.totalorder %s2325_s24, %s2106_s13  ;;  %s2111_s15 = scalar_lea.hbm %s2764_s0, 2048 }
  0x18   : > { %p2112_p5 = scmp.lt.s32.totalorder %s2325_s24, %s2764_s0  ;;  %p2113_p7 = scmp.lt.s32.totalorder %s2111_s15, %s2106_s13 }
  0x19   : > { %p2109_p3 = pnand %p2108_p2, %p2107_p1 }
  0x1a   : > { %p2114_p8 = por %p2113_p7, %p2112_p5 }
  0x1b   : > { %p2110_p4 = pneg %p2109_p3 }
  0x1d   : > { %p2115_p10 = pnand %p2114_p8, %p2110_p4 }
  0x1f   : > { %2118 = shalt.err (!%p2115_p10)
}
  0x20   : > { %s2119_s19 = scalar_lea.vmem %s2333_s26, 1024  ;;  %s2200_s25 = smov [#allocation2]  }
  0x21   : > { %p2120_p9 = scmp.ne.s32.totalorder %s2333_s26, %s2119_s19  ;;  %s2124_s14 = sshll.u32 %s2200_s25, 4  ;;  %s2125_s14 = int_to_ptr.vmem [resolvable:$false] %s2124_s14 }
  0x22   : > { %s2126_s20 = scalar_lea.vmem %s2125_s14, 2048  ;;  %p2127_p3 = scmp.lt.s32.totalorder %s2333_s26, %s2125_s14 }
  0x23   : > { %p2122_p0 = pnand %p2120_p9, %p2108_p2  ;;  %p2128_p12 = scmp.lt.s32.totalorder %s2126_s20, %s2119_s19 }
  0x25   : > { %p2123_p1 = pneg %p2122_p0  ;;  %p2129_p11 = por %p2128_p12, %p2127_p3 }
  0x27   : > { %p2130_p6 = pnand %p2129_p11, %p2123_p1 }
  0x29   : > { %2133 = shalt.err (!%p2130_p6)
}
  0x2a   : > { %s2201_s13 = smov 1024   ;;  %s2202_s21 = smov 512  }
  0x2b   : > { %s2203_s15 = smov 32   ;;  %p281_p9 = scmp.lt.s32.totalorder %s2198_s30, 3 }
  0x2c   : > { %2043 = dma.hbm_to_vmem [thread:$0]  (!%p2329_p13), %s2325_s24, 1024, %s2333_s26, %s2336_s12, %s2201_s13, %s2202_s21, %s2203_s15  }
  0x2d   : > { %p2781_p0 = scmp.ge.s32.totalorder %s2198_s30, 1 }
  0x2f   : > { %p282_p2 = pnand %p2781_p0, %p281_p9 }
  0x30   : > { %s2361_s14 = sand.u32 (!%p282_p2), 1, %s2190_s28   ;;  %p2782_p6 = scmp.ne.s32.totalorder (!%p282_p2), %s2777_s16, 0 }
  0x31   : > { %285 = sbr.rel (%p282_p2) target bundleno = 880 (0x370), region = 52  ;;  %s1969_s22 = sshll.u32 (!%p282_p2), %s2361_s14, 6 }
  0x32   : > { %s288_s23 = scalar_lea.sflag (!%p282_p2), [#allocation3], %s2361_s14  ;;  %s2367_s19 = scalar_lea.vmem (!%p282_p2), [#allocation2], %s1969_s22 }
  0x36   : > { %2177 = dma.done.wait (%p2782_p6), %s288_s23, 1024  }
  0x37   : > { %2179 = vsyncadd (%p2782_p6), %s288_s23, 4294966272  ;;  %v2204_v0 = vmov 0   ;;  %v328_v1 = vld [vmem:[%s2367_s19 + $0x8] sm:$0xff]  ;;  %v330_v3 = vld [vmem:[%s2367_s19 + $0x18] sm:$0xff]  ;;  %vm346_vm0 = vcmask 130048   ;;  %s2205_s12 = smov 16   ;;  %v444_v35 = vlaneseq }
  0x38   : > { %382 = vmatprep.mubr.bf16.mxu0 %v2204_v0  ;;  %423 = vmatprep.mubr.bf16.mxu1 %v2204_v0  ;;  %v332_v2 = vld [vmem:[%s2367_s19 + $0x28] sm:$0xff]  ;;  %v334_v5 = vld [vmem:[%s2367_s19 + $0x38] sm:$0xff]  ;;  %v2382_v6 = vld [vmem:[%s2367_s19] sm:$0xff]  ;;  %s2206_s25 = smov 17   ;;  %s2207_s20 = smov 15   ;;  %vm532_vm3 = vcmask 1043456  }
  0x39   : > { %2097 = vset.pattern.permute.xlu0 %v2204_v0  ;;  %2098 = vset.pattern.permute.xlu1 %v2204_v0  ;;  %v337_v4 = vpack.c.bf16 %v332_v2, %v328_v1  ;;  %v331_v7 = vld [vmem:[%s2367_s19 + $0x20] sm:$0xff]  ;;  %v339_v8 = vpack.c.bf16 %v334_v5, %v330_v3  ;;  %v2387_v10 = vld [vmem:[%s2367_s19 + $0x10] sm:$0xff]  ;;  %s2208_s13 = smov 1   ;;  %s2209_s21 = smov 127   ;;  %v1734_v34 = vld [vmem:[%s2771_s7 + $0x8] sm:$0xff]  ;;  %v454_v36 = vshrl.u32 %v444_v35, 7 }
  0x3a   : > { %v336_v9 = vpack.c.bf16 %v331_v7, %v2382_v6  ;;  %v333_v11 = vld [vmem:[%s2367_s19 + $0x30] sm:$0xff]  ;;  %v340_v13 = vld [vmem:[%s2767_s3] sm:$0xff]  ;;  %s2210_s15 = smov 113   ;;  %s2211_s23 = smov 112   ;;  %v2448_v37 = vand.u32 127, %v444_v35  ;;  %vm528_vm4 = vcmask 64512  }
  0x3b   : > { %364 = vmatprep.subr.bf16.mxu0 %v337_v4  ;;  %v338_v12 = vpack.c.bf16 %v333_v11, %v2387_v10  ;;  %405 = vmatprep.subr.bf16.mxu1 %v339_v8  ;;  %v335_v14 = vld [vmem:[%s2766_s2] sm:$0xf]  ;;  %s2212_s16 = smov 111   ;;  %v2450_v38 = vsub.s32 0, %v454_v36  ;;  %v2452_v39 = vsub.s32 3, %v454_v36  ;;  %v2454_v40 = vsub.s32 1, %v454_v36 }
  0x3c   : > { %365 = vmatpush1.bf16.msra.mxu0 %v336_v9  ;;  %343 = vperm.xlu0 %2097, %v340_v13   ;;  %v1733_v32 = vld [vmem:[%s2771_s7] sm:$0xff]  ;;  %v2456_v41 = vsub.s32 2, %v454_v36  ;;  %vm490_vm1 = vcmp.lt.s32.totalorder %v2448_v37, 16  ;;  %vm446_vm2 = vcmp.lt.s32.totalorder %v2448_v37, 17  ;;  %vm732_vm5 = vcmp.lt.s32.totalorder %v2448_v37, 15  ;;  %s1876_s10 = scalar_lea.sflag [#allocation4], %s2361_s14 }
  0x3d   : > { %406 = vmatpush1.bf16.msra.mxu1 %v338_v12  ;;  %v1713_v33 = vld [vmem:[%s2769_s5] sm:$0xff]  ;;  %vm879_vm6 = vcmp.lt.s32.totalorder %v2448_v37, 1  ;;  %vm1133_vm7 = vcmp.lt.s32.totalorder %v2448_v37, 127  ;;  %vm1280_vm8 = vcmp.lt.s32.totalorder %v2448_v37, 113  ;;  %vm1427_vm9 = vcmp.lt.s32.totalorder %v2448_v37, 112  ;;  %p2783_p12 = scmp.ne.s32.totalorder %s2778_s17, 0 }
  0x3e   : > { %v1973_v42 = vld [vmem:[%s2765_s1 + $0x1] ss:$8 sm:$0xf]  ;;  %v451_v50 = vld [vmem:[%s2765_s1] ss:$8 sm:$0xf] }
  0x3f   : > { %1971 = vmatmul.mubr.msk.bf16.vlgmr.msra.gmra.mxu0 %vm346_vm0, %v335_v14  ;;  %v501_v45 = vrot.slane %v1973_v42, %v2450_v38  ;;  %v513_v46 = vrot.slane %v1973_v42, %v2452_v39  ;;  %v505_v47 = vrot.slane %v1973_v42, %v2454_v40  ;;  %v509_v48 = vrot.slane %v1973_v42, %v2456_v41 }
  0x40   : > { %1972 = vmatmul.mubr.msk.bf16.vlgmr.msra.gmra.mxu1 %vm346_vm0, %v335_v14  ;;  %577 = vmatprep.mubr.bf16.mxu0 %v2204_v0  ;;  %v460_v60 = vrot.slane %v451_v50, %v2454_v40  ;;  %v456_v7 = vrot.slane %v451_v50, %v2450_v38  ;;  %v464_v11 = vrot.slane %v451_v50, %v2456_v41  ;;  %v1974_v14 = vld [vmem:[%s2768_s4 + $0x4] sm:$0xf]  ;;  %vm1574_vm10 = vcmp.lt.s32.totalorder %v2448_v37, 111 }
  0x41   : > { %618 = vmatprep.mubr.bf16.mxu1 %v2204_v0  ;;  %v468_v12 = vrot.slane %v451_v50, %v2452_v39 }
  0xb7   : > { %v344_v15 = vpop.permute.xlu0 %343 }
  0xff   : > { %v384_v16 = vpop.f32.mrf.mxu0 }
 0x100   : > { %v385_v17 = vadd.f32 %v384_v16, %v344_v15  ;;  %v425_v18 = vpop.f32.mrf.mxu1 }
 0x101   : > { %v426_v19 = vadd.f32 %v425_v18, %v344_v15  ;;  %v386_v20 = vpop.f32.mrf.mxu0 }
 0x102   : > { %v2399_v21 = vmax.f32 %v385_v17, 0.0  ;;  %v427_v22 = vpop.f32.mrf.mxu1  ;;  %v387_v24 = vadd.f32 %v386_v20, %v344_v15 }
 0x103   : > { %v2401_v23 = vmax.f32 %v426_v19, 0.0  ;;  %v428_v25 = vadd.f32 %v427_v22, %v344_v15  ;;  %v388_v26 = vpop.f32.mrf.mxu0  ;;  %v1983_v15 = vld [vmem:[%s2765_s1 + $0x2] ss:$8 sm:$0xf] }
 0x104   : > { %v429_v27 = vpop.f32.mrf.mxu1  ;;  %482 = vrot.lane.b32.xlu0 %v2399_v21, %s2205_s12  ;;  %v2407_v31 = vmax.f32 %v387_v24, 0.0  ;;  %v747_v26 = vrot.slane %v1983_v15, %v2454_v40  ;;  %v743_v36 = vrot.slane %v1983_v15, %v2450_v38 }
 0x105   : > { %486 = vrot.lane.b32.xlu1 %v2401_v23, %s2205_s12  ;;  %v389_v28 = vpop.f32.mrf.mxu0  ;;  %v2405_v29 = vmax.f32 %v428_v25, 0.0 }
 0x106   : > { %v430_v30 = vpop.f32.mrf.mxu1 }
 0x108   : > { %488 = vrot.lane.b32.xlu0 %v2405_v29, %s2205_s12 }
 0x109   : > { %484 = vrot.lane.b32.xlu1 %v2407_v31, %s2205_s12 }
 0x10c   : > { %438 = vrot.lane.b32.xlu0 %v2407_v31, %s2206_s25 }
 0x10d   : > { %436 = vrot.lane.b32.xlu1 %v2399_v21, %s2206_s25 }
 0x110   : > { %442 = vrot.lane.b32.xlu0 %v2405_v29, %s2206_s25 }
 0x111   : > { %440 = vrot.lane.b32.xlu1 %v2401_v23, %s2206_s25 }
 0x114   : > { %726 = vrot.lane.b32.xlu0 %v2407_v31, %s2207_s20 }
 0x115   : > { %724 = vrot.lane.b32.xlu1 %v2399_v21, %s2207_s20 }
 0x118   : > { %730 = vrot.lane.b32.xlu0 %v2405_v29, %s2207_s20 }
 0x119   : > { %728 = vrot.lane.b32.xlu1 %v2401_v23, %s2207_s20 }
 0x11c   : > { %873 = vrot.lane.b32.xlu0 %v2407_v31, %s2208_s13 }
 0x11d   : > { %871 = vrot.lane.b32.xlu1 %v2399_v21, %s2208_s13 }
 0x120   : > { %877 = vrot.lane.b32.xlu0 %v2405_v29, %s2208_s13 }
 0x121   : > { %875 = vrot.lane.b32.xlu1 %v2401_v23, %s2208_s13 }
 0x124   : > { %1127 = vrot.lane.b32.xlu0 %v2407_v31, %s2209_s21 }
 0x125   : > { %1125 = vrot.lane.b32.xlu1 %v2399_v21, %s2209_s21 }
 0x128   : > { %1131 = vrot.lane.b32.xlu0 %v2405_v29, %s2209_s21 }
 0x129   : > { %1129 = vrot.lane.b32.xlu1 %v2401_v23, %s2209_s21 }
 0x12c   : > { %1274 = vrot.lane.b32.xlu0 %v2407_v31, %s2210_s15 }
 0x12d   : > { %1272 = vrot.lane.b32.xlu1 %v2399_v21, %s2210_s15 }
 0x130   : > { %1278 = vrot.lane.b32.xlu0 %v2405_v29, %s2210_s15 }
 0x131   : > { %1276 = vrot.lane.b32.xlu1 %v2401_v23, %s2210_s15 }
 0x134   : > { %1421 = vrot.lane.b32.xlu0 %v2407_v31, %s2211_s23 }
 0x135   : > { %1419 = vrot.lane.b32.xlu1 %v2399_v21, %s2211_s23 }
 0x138   : > { %1425 = vrot.lane.b32.xlu0 %v2405_v29, %s2211_s23 }
 0x139   : > { %1423 = vrot.lane.b32.xlu1 %v2401_v23, %s2211_s23  ;;  %s2700_s23 = scalar_lea.vmem [#allocation5], %s1969_s22  ;;  %s2035_s22 = sshll.u32 %s2283_s9, 9 }
 0x13a   : > { %s2717_s26 = scalar_lea.hbm %s2772_s8, %s2035_s22 }
 0x13c   : > { %1568 = vrot.lane.b32.xlu0 %v2407_v31, %s2212_s16 }
 0x13d   : > { %1566 = vrot.lane.b32.xlu1 %v2399_v21, %s2212_s16 }
 0x140   : > { %1572 = vrot.lane.b32.xlu0 %v2405_v29, %s2212_s16 }
 0x141   : > { %1570 = vrot.lane.b32.xlu1 %v2401_v23, %s2212_s16  ;;  %s1889_s16 = sshll.u32 %s2700_s23, 4  ;;  %s2708_s16 = int_to_ptr.vmem [resolvable:$true] %s1889_s16 }
 0x142   : > { %s2134_s12 = scalar_lea.vmem %s2708_s16, 1024 }
 0x143   : > { %p2135_p11 = scmp.ne.s32.totalorder %s2708_s16, %s2134_s12 }
 0x144   : > { %1737 = vperm.xlu0 %2097, %v1733_v32  }
 0x145   : > { %1716 = vperm.xlu1 %2098, %v1713_v33   ;;  %p2136_p13 = pnand %p2135_p11, %p2783_p12 }
 0x147   : > { %p2137_p4 = pneg %p2136_p13 }
 0x149   : > { %1742 = vperm.xlu1 %2098, %v1734_v34  }
 0x176   : > { %v483_v43 = vpop.permute.xlu0 %482 }
 0x177   : > { %v487_v44 = vpop.permute.xlu1 %486 }
 0x17a   : > { %v489_v49 = vpop.permute.xlu0 %488 }
 0x17b   : > { %v485_v51 = vpop.permute.xlu1 %484  ;;  %v491_v52 = vsel %vm490_vm1, %v487_v44, %v489_v49  ;;  %v494_v53 = vsel %vm490_vm1, %v489_v49, %v483_v43 }
 0x17c   : > { %v492_v54 = vsel %vm490_vm1, %v485_v51, %v487_v44  ;;  %v493_v55 = vsel %vm490_vm1, %v483_v43, %v485_v51  ;;  %v518_v56 = vmul.f32 %v501_v45, %v494_v53  ;;  %v521_v57 = vmul.f32 %v513_v46, %v491_v52 }
 0x17d   : > { %v519_v58 = vmul.f32 %v505_v47, %v493_v55  ;;  %v520_v59 = vmul.f32 %v509_v48, %v492_v54  ;;  %v751_v44 = vrot.slane %v1983_v15, %v2456_v41  ;;  %v755_v45 = vrot.slane %v1983_v15, %v2452_v39  ;;  %v477_v47 = vld [vmem:[%s2768_s4] sm:$0xf] }
 0x17e   : > { %v524_v61 = vpack.c.bf16 %v518_v56, %v518_v56  ;;  %v527_v62 = vpack.c.bf16 %v521_v57, %v521_v57  ;;  %v439_v63 = vpop.permute.xlu0 %438  ;;  %v1989_v48 = vld [vmem:[%s2765_s1 + $0x3] ss:$8 sm:$0xf] }
 0x17f   : > { %v525_v1 = vpack.c.bf16 %v519_v58, %v519_v58  ;;  %v526_v2 = vpack.c.bf16 %v520_v59, %v520_v59  ;;  %v437_v3 = vpop.permute.xlu1 %436  ;;  %v894_v57 = vrot.slane %v1989_v48, %v2454_v40 }
 0x180   : > { %v449_v4 = vsel %vm446_vm2, %v437_v3, %v439_v63  ;;  %1977 = vmatprep.subr.msk.bf16.mxu1 %vm532_vm3, %v527_v62  ;;  %v534_v5 = vsel %vm532_vm3, %v524_v61, 0 }
 0x181   : > { %v474_v8 = vmul.f32 %v460_v60, %v449_v4  ;;  %1975 = vmatprep.subr.msk.bf16.mxu0 %vm532_vm3, %v525_v1  ;;  %v540_v9 = vsel %vm532_vm3, %v526_v2, 0  ;;  %v890_v2 = vrot.slane %v1989_v48, %v2450_v38 }
 0x182   : > { %560 = vmatpush1.bf16.msra.mxu0 %v534_v5  ;;  %601 = vmatpush1.bf16.msra.mxu1 %v540_v9  ;;  %v443_v13 = vpop.permute.xlu0 %442  ;;  %v898_v5 = vrot.slane %v1989_v48, %v2456_v41  ;;  %v1984_v9 = vld [vmem:[%s2768_s4 + $0x8] sm:$0xf] }
 0x183   : > { %v479_v16 = vpack.c.bf16 %v474_v8, %v474_v8  ;;  %v441_v17 = vpop.permute.xlu1 %440  ;;  %v450_v18 = vsel %vm446_vm2, %v443_v13, %v437_v3 }
 0x184   : > { %v448_v19 = vsel %vm446_vm2, %v439_v63, %v441_v17  ;;  %v447_v20 = vsel %vm446_vm2, %v441_v17, %v443_v13  ;;  %v473_v22 = vmul.f32 %v456_v7, %v450_v18  ;;  %v902_v7 = vrot.slane %v1989_v48, %v2452_v39 }
 0x185   : > { %v475_v24 = vmul.f32 %v464_v11, %v448_v19  ;;  %v476_v25 = vmul.f32 %v468_v12, %v447_v20  ;;  %1976 = vmatmul.mubr.msk.bf16.vlgmr.msra.gmra.mxu0 %vm528_vm4, %v1974_v14  ;;  %1978 = vmatmul.mubr.msk.bf16.vlgmr.msra.gmra.mxu1 %vm528_vm4, %v1974_v14  ;;  %v2000_v19 = vld [vmem:[%s2765_s1 + $0x5] ss:$8 sm:$0xf] }
 0x186   : > { %v478_v27 = vpack.c.bf16 %v473_v22, %v473_v22  ;;  %1979 = vmatprep.subr.msk.bf16.mxu0 %vm532_vm3, %v479_v16  ;;  %v727_v28 = vpop.permute.xlu0 %726  ;;  %674 = vmatprep.mubr.bf16.mxu0 %v2204_v0 }
 0x187   : > { %v480_v30 = vpack.c.bf16 %v475_v24, %v475_v24  ;;  %v481_v32 = vpack.c.bf16 %v476_v25, %v476_v25  ;;  %v725_v33 = vpop.permute.xlu1 %724  ;;  %715 = vmatprep.mubr.bf16.mxu1 %v2204_v0  ;;  %v1020_v24 = vpack.c.bf16 %v2399_v21, %v2399_v21  ;;  %v1156_v21 = vrot.slane %v2000_v19, %v2452_v39 }
 0x188   : > { %v735_v34 = vsel %vm732_vm5, %v725_v33, %v727_v28  ;;  %v631_v35 = vsel %vm532_vm3, %v478_v27, 0 }
 0x189   : > { %v761_v42 = vmul.f32 %v747_v26, %v735_v34  ;;  %1981 = vmatprep.subr.msk.bf16.mxu1 %vm532_vm3, %v481_v32  ;;  %657 = vmatpush1.bf16.msra.mxu0 %v631_v35  ;;  %v637_v43 = vsel %vm532_vm3, %v480_v30, 0  ;;  %v1022_v30 = vpack.c.bf16 %v2401_v23, %v2401_v23  ;;  %v1144_v32 = vrot.slane %v2000_v19, %v2450_v38 }
 0x18a   : > { %698 = vmatpush1.bf16.msra.mxu1 %v637_v43  ;;  %v731_v46 = vpop.permute.xlu0 %730  ;;  %v1023_v34 = vpack.c.bf16 %v2405_v29, %v2405_v29  ;;  %v1152_v23 = vrot.slane %v2000_v19, %v2456_v41  ;;  %v1990_v29 = vld [vmem:[%s2768_s4 + $0xc] sm:$0xf] }
 0x18b   : > { %v767_v49 = vpack.c.bf16 %v761_v42, %v761_v42  ;;  %v729_v50 = vpop.permute.xlu1 %728  ;;  %v736_v51 = vsel %vm732_vm5, %v731_v46, %v725_v33 }
 0x18c   : > { %v734_v52 = vsel %vm732_vm5, %v727_v28, %v729_v50  ;;  %v733_v53 = vsel %vm732_vm5, %v729_v50, %v731_v46  ;;  %v760_v54 = vmul.f32 %v743_v36, %v736_v51  ;;  %v1021_v28 = vpack.c.bf16 %v2407_v31, %v2407_v31 }
 0x18d   : > { %v762_v55 = vmul.f32 %v751_v44, %v734_v52  ;;  %v763_v56 = vmul.f32 %v755_v45, %v733_v53  ;;  %1980 = vmatmul.mubr.msk.bf16.vlgmr.msra.gmra.mxu0 %vm528_vm4, %v477_v47  ;;  %1982 = vmatmul.mubr.msk.bf16.vlgmr.msra.gmra.mxu1 %vm528_vm4, %v477_v47  ;;  %v1148_v36 = vrot.slane %v2000_v19, %v2454_v40  ;;  %v1028_v51 = vsel %vm532_vm3, %v1020_v24, 0 }
 0x18e   : > { %v766_v58 = vpack.c.bf16 %v760_v54, %v760_v54  ;;  %1985 = vmatprep.subr.msk.bf16.mxu0 %vm532_vm3, %v767_v49  ;;  %v874_v59 = vpop.permute.xlu0 %873  ;;  %817 = vmatprep.mubr.bf16.mxu0 %v2204_v0  ;;  %v1034_v52 = vsel %vm532_vm3, %v1022_v30, 0  ;;  %v2006_v54 = vld [vmem:[%s2765_s1 + $0x6] ss:$8 sm:$0xf] }
 0x18f   : > { %v768_v60 = vpack.c.bf16 %v762_v55, %v762_v55  ;;  %v769_v61 = vpack.c.bf16 %v763_v56, %v763_v56  ;;  %v872_v62 = vpop.permute.xlu1 %871  ;;  %858 = vmatprep.mubr.bf16.mxu1 %v2204_v0 }
 0x190   : > { %v882_v63 = vsel %vm879_vm6, %v872_v62, %v874_v59  ;;  %v774_v1 = vsel %vm532_vm3, %v766_v58, 0 }
 0x191   : > { %v908_v3 = vmul.f32 %v894_v57, %v882_v63  ;;  %1987 = vmatprep.subr.msk.bf16.mxu1 %vm532_vm3, %v769_v61  ;;  %800 = vmatpush1.bf16.msra.mxu0 %v774_v1  ;;  %v780_v4 = vsel %vm532_vm3, %v768_v60, 0  ;;  %v1291_v61 = vrot.slane %v2006_v54, %v2450_v38  ;;  %v1299_v63 = vrot.slane %v2006_v54, %v2456_v41 }
 0x192   : > { %841 = vmatpush1.bf16.msra.mxu1 %v780_v4  ;;  %v878_v8 = vpop.permute.xlu0 %877 }
 0x193   : > { %v914_v11 = vpack.c.bf16 %v908_v3, %v908_v3  ;;  %v876_v12 = vpop.permute.xlu1 %875  ;;  %v883_v13 = vsel %vm879_vm6, %v878_v8, %v872_v62  ;;  %v1295_v62 = vrot.slane %v2006_v54, %v2454_v40  ;;  %v1995_v3 = vld [vmem:[%s2768_s4 + $0x10] sm:$0xf] }
 0x194   : > { %v881_v14 = vsel %vm879_vm6, %v874_v59, %v876_v12  ;;  %v880_v15 = vsel %vm879_vm6, %v876_v12, %v878_v8  ;;  %v907_v16 = vmul.f32 %v890_v2, %v883_v13  ;;  %v1303_v59 = vrot.slane %v2006_v54, %v2452_v39 }
 0x195   : > { %v909_v17 = vmul.f32 %v898_v5, %v881_v14  ;;  %v910_v18 = vmul.f32 %v902_v7, %v880_v15  ;;  %1986 = vmatmul.mubr.msk.bf16.vlgmr.msra.gmra.mxu0 %vm528_vm4, %v1984_v9  ;;  %1988 = vmatmul.mubr.msk.bf16.vlgmr.msra.gmra.mxu1 %vm528_vm4, %v1984_v9 }
 0x196   : > { %v913_v20 = vpack.c.bf16 %v907_v16, %v907_v16  ;;  %1991 = vmatprep.subr.msk.bf16.mxu0 %vm532_vm3, %v914_v11  ;;  %v1128_v22 = vpop.permute.xlu0 %1127  ;;  %964 = vmatprep.mubr.bf16.mxu0 %v2204_v0  ;;  %v2012_v16 = vld [vmem:[%s2765_s1 + $0x7] ss:$8 sm:$0xf] }
 0x197   : > { %v915_v25 = vpack.c.bf16 %v909_v17, %v909_v17  ;;  %v916_v26 = vpack.c.bf16 %v910_v18, %v910_v18  ;;  %v1126_v27 = vpop.permute.xlu1 %1125  ;;  %1005 = vmatprep.mubr.bf16.mxu1 %v2204_v0  ;;  %v1442_v24 = vrot.slane %v2012_v16, %v2454_v40  ;;  %v1446_v30 = vrot.slane %v2012_v16, %v2456_v41 }
 0x198   : > { %v921_v33 = vsel %vm532_vm3, %v913_v20, 0  ;;  %v1136_v35 = vsel %vm1133_vm7, %v1126_v27, %v1128_v22 }
 0x199   : > { %1993 = vmatprep.subr.msk.bf16.mxu1 %vm532_vm3, %v916_v26  ;;  %947 = vmatpush1.bf16.msra.mxu0 %v921_v33  ;;  %v927_v31 = vsel %vm532_vm3, %v915_v25, 0  ;;  %v1161_v45 = vmul.f32 %v1144_v32, %v1136_v35  ;;  %v1450_v25 = vrot.slane %v2012_v16, %v2452_v39  ;;  %v2001_v33 = vld [vmem:[%s2768_s4 + $0x14] sm:$0xf] }
 0x19a   : > { %988 = vmatpush1.bf16.msra.mxu1 %v927_v31  ;;  %1996 = vmatprep.subr.msk.bf16.mxu0 %vm532_vm3, %v1021_v28  ;;  %v1132_v42 = vpop.permute.xlu0 %1131 }
 0x19b   : > { %v1130_v43 = vpop.permute.xlu1 %1129  ;;  %1998 = vmatprep.subr.msk.bf16.mxu1 %vm532_vm3, %v1023_v34  ;;  %v1137_v44 = vsel %vm1133_vm7, %v1132_v42, %v1126_v27  ;;  %v1167_v58 = vpack.c.bf16 %v1161_v45, %v1161_v45 }
 0x19c   : > { %v1135_v46 = vsel %vm1133_vm7, %v1128_v22, %v1130_v43  ;;  %v1134_v47 = vsel %vm1133_vm7, %v1130_v43, %v1132_v42  ;;  %v1164_v48 = vmul.f32 %v1156_v21, %v1137_v44  ;;  %v1438_v22 = vrot.slane %v2012_v16, %v2450_v38 }
 0x19d   : > { %v1162_v49 = vmul.f32 %v1148_v36, %v1135_v46  ;;  %v1163_v50 = vmul.f32 %v1152_v23, %v1134_v47  ;;  %1992 = vmatmul.mubr.msk.bf16.vlgmr.msra.gmra.mxu0 %vm528_vm4, %v1990_v29  ;;  %1994 = vmatmul.mubr.msk.bf16.vlgmr.msra.gmra.mxu1 %vm528_vm4, %v1990_v29  ;;  %v1175_v11 = vsel %vm532_vm3, %v1167_v58, 0  ;;  %v2018_v46 = vld [vmem:[%s2765_s1 + $0x20] ss:$8 sm:$0xf] }
 0x19e   : > { %v1170_v53 = vpack.c.bf16 %v1164_v48, %v1164_v48  ;;  %1054 = vmatpush1.bf16.msra.mxu0 %v1028_v51  ;;  %1095 = vmatpush1.bf16.msra.mxu1 %v1034_v52  ;;  %v1275_v55 = vpop.permute.xlu0 %1274  ;;  %v1597_v51 = vrot.slane %v2018_v46, %v2452_v39  ;;  %v1589_v54 = vrot.slane %v2018_v46, %v2454_v40  ;;  %v2007_v58 = vld [vmem:[%s2768_s4 + $0x18] sm:$0xf] }
 0x19f   : > { %v1168_v56 = vpack.c.bf16 %v1162_v49, %v1162_v49  ;;  %v1273_v57 = vpop.permute.xlu1 %1272  ;;  %1071 = vmatprep.mubr.bf16.mxu0 %v2204_v0  ;;  %1112 = vmatprep.mubr.bf16.mxu1 %v2204_v0  ;;  %v1169_v60 = vpack.c.bf16 %v1163_v50, %v1163_v50 }
 0x1a0   : > { %2004 = vmatprep.subr.msk.bf16.mxu1 %vm532_vm3, %v1170_v53  ;;  %v1283_v1 = vsel %vm1280_vm8, %v1273_v57, %v1275_v55  ;;  %v1585_v53 = vrot.slane %v2018_v46, %v2450_v38 }
 0x1a1   : > { %2002 = vmatprep.subr.msk.bf16.mxu0 %vm532_vm3, %v1168_v56  ;;  %v1308_v12 = vmul.f32 %v1291_v61, %v1283_v1  ;;  %v1181_v15 = vsel %vm532_vm3, %v1169_v60, 0 }
 0x1a2   : > { %v1279_v2 = vpop.permute.xlu0 %1278 }
 0x1a3   : > { %v1277_v4 = vpop.permute.xlu1 %1276  ;;  %v1284_v5 = vsel %vm1280_vm8, %v1279_v2, %v1273_v57  ;;  %v1314_v26 = vpack.c.bf16 %v1308_v12, %v1308_v12 }
 0x1a4   : > { %v1282_v7 = vsel %vm1280_vm8, %v1275_v55, %v1277_v4  ;;  %v1281_v8 = vsel %vm1280_vm8, %v1277_v4, %v1279_v2  ;;  %v1311_v9 = vmul.f32 %v1303_v59, %v1284_v5  ;;  %v1593_v55 = vrot.slane %v2018_v46, %v2456_v41  ;;  %v2013_v5 = vld [vmem:[%s2768_s4 + $0x1c] sm:$0xf] }
 0x1a5   : > { %v1309_v13 = vmul.f32 %v1295_v62, %v1282_v7  ;;  %v1310_v14 = vmul.f32 %v1299_v63, %v1281_v8  ;;  %1997 = vmatmul.mubr.msk.bf16.vlgmr.msra.gmra.mxu0 %vm528_vm4, %v1995_v3  ;;  %1999 = vmatmul.mubr.msk.bf16.vlgmr.msra.gmra.mxu1 %vm528_vm4, %v1995_v3  ;;  %v1322_v43 = vsel %vm532_vm3, %v1314_v26, 0 }
 0x1a6   : > { %v1317_v17 = vpack.c.bf16 %v1311_v9, %v1311_v9  ;;  %1201 = vmatpush1.bf16.msra.mxu0 %v1175_v11  ;;  %1242 = vmatpush1.bf16.msra.mxu1 %v1181_v15  ;;  %v1422_v18 = vpop.permute.xlu0 %1421  ;;  %v2019_v9 = vld [vmem:[%s2768_s4 + $0x20] sm:$0xf] }
 0x1a7   : > { %v1315_v19 = vpack.c.bf16 %v1309_v13, %v1309_v13  ;;  %v1420_v20 = vpop.permute.xlu1 %1419  ;;  %1218 = vmatprep.mubr.bf16.mxu0 %v2204_v0  ;;  %1259 = vmatprep.mubr.bf16.mxu1 %v2204_v0  ;;  %v1316_v27 = vpack.c.bf16 %v1310_v14, %v1310_v14 }
 0x1a8   : > { %2010 = vmatprep.subr.msk.bf16.mxu1 %vm532_vm3, %v1317_v17  ;;  %v1430_v28 = vsel %vm1427_vm9, %v1420_v20, %v1422_v18 }
 0x1a9   : > { %2008 = vmatprep.subr.msk.bf16.mxu0 %vm532_vm3, %v1315_v19  ;;  %v1455_v35 = vmul.f32 %v1438_v22, %v1430_v28  ;;  %v1328_v44 = vsel %vm532_vm3, %v1316_v27, 0 }
 0x1aa   : > { %v1426_v32 = vpop.permute.xlu0 %1425 }
 0x1ab   : > { %v1424_v34 = vpop.permute.xlu1 %1423  ;;  %v1431_v21 = vsel %vm1427_vm9, %v1426_v32, %v1420_v20  ;;  %v1461_v50 = vpack.c.bf16 %v1455_v35, %v1455_v35 }
 0x1ac   : > { %v1429_v31 = vsel %vm1427_vm9, %v1422_v18, %v1424_v34  ;;  %v1428_v36 = vsel %vm1427_vm9, %v1424_v34, %v1426_v32  ;;  %v1458_v23 = vmul.f32 %v1450_v25, %v1431_v21 }
 0x1ad   : > { %v1456_v42 = vmul.f32 %v1442_v24, %v1429_v31  ;;  %v1457_v29 = vmul.f32 %v1446_v30, %v1428_v36  ;;  %2003 = vmatmul.mubr.msk.bf16.vlgmr.msra.gmra.mxu0 %vm528_vm4, %v2001_v33  ;;  %2005 = vmatmul.mubr.msk.bf16.vlgmr.msra.gmra.mxu1 %vm528_vm4, %v2001_v33  ;;  %v1469_v41 = vsel %vm532_vm3, %v1461_v50, 0 }
 0x1ae   : > { %v1464_v45 = vpack.c.bf16 %v1458_v23, %v1458_v23  ;;  %1348 = vmatpush1.bf16.msra.mxu0 %v1322_v43  ;;  %1389 = vmatpush1.bf16.msra.mxu1 %v1328_v44  ;;  %v1569_v47 = vpop.permute.xlu0 %1568 }
 0x1af   : > { %v1462_v48 = vpack.c.bf16 %v1456_v42, %v1456_v42  ;;  %v1567_v49 = vpop.permute.xlu1 %1566  ;;  %1365 = vmatprep.mubr.bf16.mxu0 %v2204_v0  ;;  %1406 = vmatprep.mubr.bf16.mxu1 %v2204_v0  ;;  %v1463_v52 = vpack.c.bf16 %v1457_v29, %v1457_v29 }
 0x1b0   : > { %2016 = vmatprep.subr.msk.bf16.mxu1 %vm532_vm3, %v1464_v45  ;;  %v1577_v56 = vsel %vm1574_vm10, %v1567_v49, %v1569_v47 }
 0x1b1   : > { %2014 = vmatprep.subr.msk.bf16.mxu0 %vm532_vm3, %v1462_v48  ;;  %v1602_v61 = vmul.f32 %v1585_v53, %v1577_v56  ;;  %v1475_v1 = vsel %vm532_vm3, %v1463_v52, 0 }
 0x1b2   : > { %v1573_v57 = vpop.permute.xlu0 %1572 }
 0x1b3   : > { %v1571_v59 = vpop.permute.xlu1 %1570  ;;  %v1578_v39 = vsel %vm1574_vm10, %v1573_v57, %v1567_v49  ;;  %v1608_v37 = vpack.c.bf16 %v1602_v61, %v1602_v61 }
 0x1b4   : > { %v1576_v38 = vsel %vm1574_vm10, %v1569_v47, %v1571_v59  ;;  %v1575_v40 = vsel %vm1574_vm10, %v1571_v59, %v1573_v57  ;;  %v1605_v60 = vmul.f32 %v1597_v51, %v1578_v39 }
 0x1b5   : > { %v1603_v62 = vmul.f32 %v1589_v54, %v1576_v38  ;;  %v1604_v63 = vmul.f32 %v1593_v55, %v1575_v40  ;;  %2009 = vmatmul.mubr.msk.bf16.vlgmr.msra.gmra.mxu0 %vm528_vm4, %v2007_v58  ;;  %2011 = vmatmul.mubr.msk.bf16.vlgmr.msra.gmra.mxu1 %vm528_vm4, %v2007_v58  ;;  %v1616_v7 = vsel %vm532_vm3, %v1608_v37, 0 }
 0x1b6   : > { %v1611_v2 = vpack.c.bf16 %v1605_v60, %v1605_v60  ;;  %1495 = vmatpush1.bf16.msra.mxu0 %v1469_v41  ;;  %1536 = vmatpush1.bf16.msra.mxu1 %v1475_v1 }
 0x1b7   : > { %v1609_v3 = vpack.c.bf16 %v1603_v62, %v1603_v62  ;;  %1512 = vmatprep.mubr.bf16.mxu0 %v2204_v0  ;;  %1553 = vmatprep.mubr.bf16.mxu1 %v2204_v0  ;;  %v1610_v4 = vpack.c.bf16 %v1604_v63, %v1604_v63 }
 0x1b8   : > { %2022 = vmatprep.subr.msk.bf16.mxu1 %vm532_vm3, %v1611_v2 }
 0x1b9   : > { %2020 = vmatprep.subr.msk.bf16.mxu0 %vm532_vm3, %v1609_v3  ;;  %v1622_v8 = vsel %vm532_vm3, %v1610_v4, 0 }
 0x1bd   : > { %2015 = vmatmul.mubr.msk.bf16.vlgmr.msra.gmra.mxu0 %vm528_vm4, %v2013_v5  ;;  %2017 = vmatmul.mubr.msk.bf16.vlgmr.msra.gmra.mxu1 %vm528_vm4, %v2013_v5 }
 0x1be   : > { %1642 = vmatpush1.bf16.msra.mxu0 %v1616_v7  ;;  %1683 = vmatpush1.bf16.msra.mxu1 %v1622_v8 }
 0x1bf   : > { %1659 = vmatprep.mubr.bf16.mxu0 %v2204_v0  ;;  %1700 = vmatprep.mubr.bf16.mxu1 %v2204_v0 }
 0x1c5   : > { %2021 = vmatmul.mubr.msk.bf16.vlgmr.msra.gmra.mxu0 %vm528_vm4, %v2019_v9  ;;  %2023 = vmatmul.mubr.msk.bf16.vlgmr.msra.gmra.mxu1 %vm528_vm4, %v2019_v9 }
 0x1c6   : > { %1797 = vmatprep.mubr.bf16.mxu0 %v2204_v0  ;;  %1840 = vmatprep.mubr.bf16.mxu1 %v2204_v0 }
 0x245   : > { %v579_v11 = vpop.f32.mrf.mxu0  ;;  %v620_v12 = vpop.f32.mrf.mxu1 }
 0x247   : > { %v581_v13 = vpop.f32.mrf.mxu0  ;;  %v622_v14 = vpop.f32.mrf.mxu1 }
 0x249   : > { %v583_v15 = vpop.f32.mrf.mxu0  ;;  %v624_v16 = vpop.f32.mrf.mxu1 }
 0x24b   : > { %v584_v17 = vpop.f32.mrf.mxu0  ;;  %v625_v18 = vpop.f32.mrf.mxu1 }
 0x24d   : > { %v676_v19 = vpop.f32.mrf.mxu0  ;;  %v717_v20 = vpop.f32.mrf.mxu1 }
 0x24e   : > { %v677_v63 = vadd.f32 %v676_v19, %v579_v11  ;;  %v718_v1 = vadd.f32 %v717_v20, %v620_v12 }
 0x24f   : > { %v678_v22 = vpop.f32.mrf.mxu0  ;;  %v719_v24 = vpop.f32.mrf.mxu1 }
 0x250   : > { %v679_v37 = vadd.f32 %v678_v22, %v581_v13  ;;  %v720_v4 = vadd.f32 %v719_v24, %v622_v14 }
 0x251   : > { %v680_v25 = vpop.f32.mrf.mxu0  ;;  %v721_v26 = vpop.f32.mrf.mxu1 }
 0x253   : > { %v681_v27 = vpop.f32.mrf.mxu0  ;;  %v722_v28 = vpop.f32.mrf.mxu1 }
 0x255   : > { %v819_v30 = vpop.f32.mrf.mxu0  ;;  %v860_v32 = vpop.f32.mrf.mxu1 }
 0x256   : > { %v867_v5 = vadd.f32 %v819_v30, %v677_v63  ;;  %v869_v7 = vadd.f32 %v860_v32, %v718_v1 }
 0x257   : > { %v821_v33 = vpop.f32.mrf.mxu0  ;;  %v862_v0 = vpop.f32.mrf.mxu1 }
 0x258   : > { %v868_v15 = vadd.f32 %v821_v33, %v679_v37  ;;  %v870_v16 = vadd.f32 %v862_v0, %v720_v4  ;;  %v2099_v4 = vld [vmem:[%s2770_s6] sm:$0xff]  }
 0x259   : > { %v823_v34 = vpop.f32.mrf.mxu0  ;;  %v864_v21 = vpop.f32.mrf.mxu1 }
 0x25b   : > { %v824_v35 = vpop.f32.mrf.mxu0  ;;  %v865_v31 = vpop.f32.mrf.mxu1 }
 0x25d   : > { %v966_v36 = vpop.f32.mrf.mxu0  ;;  %v1007_v23 = vpop.f32.mrf.mxu1 }
 0x25e   : > { %v1014_v17 = vadd.f32 %v966_v36, %v867_v5  ;;  %v1016_v18 = vadd.f32 %v1007_v23, %v869_v7  ;;  %v1738_v5 = vpop.permute.xlu0 %1737 }
 0x25f   : > { %v968_v42 = vpop.f32.mrf.mxu0  ;;  %v1009_v29 = vpop.f32.mrf.mxu1 }
 0x260   : > { %v1015_v27 = vadd.f32 %v968_v42, %v868_v15  ;;  %v1017_v28 = vadd.f32 %v1009_v29, %v870_v16 }
 0x261   : > { %v970_v43 = vpop.f32.mrf.mxu0  ;;  %v1011_v44 = vpop.f32.mrf.mxu1 }
 0x263   : > { %v971_v45 = vpop.f32.mrf.mxu0  ;;  %v1012_v46 = vpop.f32.mrf.mxu1 }
 0x265   : > { %v1073_v47 = vpop.f32.mrf.mxu0  ;;  %v1114_v48 = vpop.f32.mrf.mxu1 }
 0x266   : > { %v1121_v34 = vadd.f32 %v1073_v47, %v1014_v17  ;;  %v1123_v21 = vadd.f32 %v1114_v48, %v1016_v18  ;;  %v1717_v47 = vpop.permute.xlu1 %1716 }
 0x267   : > { %v1075_v49 = vpop.f32.mrf.mxu0  ;;  %v1116_v50 = vpop.f32.mrf.mxu1 }
 0x268   : > { %v1122_v19 = vadd.f32 %v1075_v49, %v1015_v27  ;;  %v1124_v20 = vadd.f32 %v1116_v50, %v1017_v28 }
 0x269   : > { %v1077_v51 = vpop.f32.mrf.mxu0  ;;  %v1118_v52 = vpop.f32.mrf.mxu1 }
 0x26b   : > { %v1078_v53 = vpop.f32.mrf.mxu0  ;;  %v1119_v54 = vpop.f32.mrf.mxu1 }
 0x26d   : > { %v1220_v55 = vpop.f32.mrf.mxu0  ;;  %v1261_v56 = vpop.f32.mrf.mxu1 }
 0x26e   : > { %v1268_v13 = vadd.f32 %v1220_v55, %v1121_v34  ;;  %v1270_v14 = vadd.f32 %v1261_v56, %v1123_v21  ;;  %v1743_v21 = vpop.permute.xlu1 %1742 }
 0x26f   : > { %v1222_v57 = vpop.f32.mrf.mxu0  ;;  %v1263_v58 = vpop.f32.mrf.mxu1 }
 0x270   : > { %v1269_v30 = vadd.f32 %v1222_v57, %v1122_v19  ;;  %v1271_v32 = vadd.f32 %v1263_v58, %v1124_v20  ;;  %v2100_v19 = vld [vmem:[%s2367_s19 + $0x8] sm:$0xff] }
 0x271   : > { %v1224_v59 = vpop.f32.mrf.mxu0  ;;  %v1265_v39 = vpop.f32.mrf.mxu1 }
 0x273   : > { %v1225_v38 = vpop.f32.mrf.mxu0  ;;  %v1266_v40 = vpop.f32.mrf.mxu1 }
 0x275   : > { %v1367_v60 = vpop.f32.mrf.mxu0  ;;  %v1408_v41 = vpop.f32.mrf.mxu1 }
 0x276   : > { %v1415_v33 = vadd.f32 %v1367_v60, %v1268_v13  ;;  %v1417_v0 = vadd.f32 %v1408_v41, %v1270_v14  ;;  %v2101_v13 = vld [vmem:[%s2367_s19 + $0x18] sm:$0xff] }
 0x277   : > { %v1369_v61 = vpop.f32.mrf.mxu0  ;;  %v1410_v62 = vpop.f32.mrf.mxu1 }
 0x278   : > { %v1416_v36 = vadd.f32 %v1369_v61, %v1269_v30  ;;  %v1418_v23 = vadd.f32 %v1410_v62, %v1271_v32 }
 0x279   : > { %v1371_v2 = vpop.f32.mrf.mxu0  ;;  %v1412_v3 = vpop.f32.mrf.mxu1 }
 0x27b   : > { %v1372_v8 = vpop.f32.mrf.mxu0  ;;  %v1413_v9 = vpop.f32.mrf.mxu1 }
 0x27d   : > { %v1514_v25 = vpop.f32.mrf.mxu0  ;;  %v1555_v26 = vpop.f32.mrf.mxu1 }
 0x27e   : > { %v1562_v42 = vadd.f32 %v1514_v25, %v1415_v33  ;;  %v1564_v29 = vadd.f32 %v1555_v26, %v1417_v0 }
 0x27f   : > { %v1516_v11 = vpop.f32.mrf.mxu0  ;;  %v1557_v12 = vpop.f32.mrf.mxu1 }
 0x280   : > { %v1563_v45 = vadd.f32 %v1516_v11, %v1416_v36  ;;  %v1565_v46 = vadd.f32 %v1557_v12, %v1418_v23  ;;  %v2103_v36 = vld [vmem:[%s2367_s19 + $0x30] sm:$0xff] }
 0x281   : > { %v1518_v22 = vpop.f32.mrf.mxu0  ;;  %v1559_v24 = vpop.f32.mrf.mxu1 }
 0x283   : > { %v1519_v35 = vpop.f32.mrf.mxu0  ;;  %v1560_v31 = vpop.f32.mrf.mxu1 }
 0x284   : > { %v2102_v35 = vld [vmem:[%s2367_s19 + $0x20] sm:$0xff] }
 0x285   : > { %v1661_v43 = vpop.f32.mrf.mxu0  ;;  %v1702_v44 = vpop.f32.mrf.mxu1 }
 0x286   : > { %v1709_v48 = vadd.f32 %v1661_v43, %v1562_v42  ;;  %v1711_v49 = vadd.f32 %v1702_v44, %v1564_v29  ;;  %v2104_v42 = vld [vmem:[%s2367_s19 + $0x28] sm:$0xff]  ;;  %v2105_v43 = vld [vmem:[%s2367_s19 + $0x38] sm:$0xff]  ;;  %s2213_s19 = smov [#allocation5]  }
 0x287   : > { %v1663_v50 = vpop.f32.mrf.mxu0  ;;  %v1704_v51 = vpop.f32.mrf.mxu1  ;;  %s2138_s25 = sshll.u32 %s2213_s19, 4  ;;  %s2139_s25 = int_to_ptr.vmem [resolvable:$false] %s2138_s25 }
 0x288   : > { %v1719_v52 = vadd.f32 %v1717_v47, %v1709_v48  ;;  %v1721_v53 = vadd.f32 %v1717_v47, %v1711_v49  ;;  %v1710_v54 = vadd.f32 %v1663_v50, %v1563_v45  ;;  %v1712_v55 = vadd.f32 %v1704_v51, %v1565_v46  ;;  %s2140_s20 = scalar_lea.vmem %s2139_s25, 2048  ;;  %p2141_p5 = scmp.lt.s32.totalorder %s2708_s16, %s2139_s25 }
 0x289   : > { %v1665_v56 = vpop.f32.mrf.mxu0  ;;  %v1706_v57 = vpop.f32.mrf.mxu1  ;;  %p2142_p7 = scmp.lt.s32.totalorder %s2140_s20, %s2134_s12 }
 0x28a   : > { %v1723_v58 = vmax.f32 %v1719_v52, 0.0  ;;  %v1725_v59 = vmax.f32 %v1721_v53, 0.0  ;;  %v1720_v39 = vadd.f32 %v1717_v47, %v1710_v54  ;;  %v1722_v38 = vadd.f32 %v1717_v47, %v1712_v55 }
 0x28b   : > { %v1666_v40 = vpop.f32.mrf.mxu0  ;;  %v1707_v60 = vpop.f32.mrf.mxu1  ;;  %p2143_p8 = por %p2142_p7, %p2141_p5 }
 0x28c   : > { %v1729_v41 = vpack.c.bf16 %v1723_v58, %v1723_v58  ;;  %v1731_v61 = vpack.c.bf16 %v1725_v59, %v1725_v59  ;;  %v1724_v62 = vmax.f32 %v1720_v39, 0.0  ;;  %v1726_v63 = vmax.f32 %v1722_v38, 0.0 }
 0x28d   : > { %p2144_p10 = pnand %p2143_p8, %p2137_p4 }
 0x28e   : > { %v1730_v1 = vpack.c.bf16 %v1724_v62, %v1724_v62  ;;  %v1732_v2 = vpack.c.bf16 %v1726_v63, %v1726_v63  ;;  %v1754_v3 = vsel %vm532_vm3, %v1729_v41, 0  ;;  %v1760_v37 = vsel %vm532_vm3, %v1731_v61, 0 }
 0x290   : > { %2025 = vmatprep.subr.msk.bf16.mxu0 %vm532_vm3, %v1730_v1  ;;  %2027 = vmatprep.subr.msk.bf16.mxu1 %vm532_vm3, %v1732_v2 }
 0x291   : > { %1780 = vmatpush1.bf16.msra.mxu0 %v1754_v3  ;;  %1823 = vmatpush1.bf16.msra.mxu1 %v1760_v37 }
 0x294   : > { %2026 = vmatmul.mubr.msk.bf16.vlgmr.msra.gmra.mxu0 %vm528_vm4, %v2099_v4  ;;  %2028 = vmatmul.mubr.msk.bf16.vlgmr.msra.gmra.mxu1 %vm528_vm4, %v2099_v4 }
 0x354   : > { %v1799_v7 = vpop.f32.mrf.mxu0  ;;  %v1842_v8 = vpop.f32.mrf.mxu1 }
 0x355   : > { %v1800_v9 = vadd.f32 %v1799_v7, %v1738_v5  ;;  %v1843_v15 = vadd.f32 %v1842_v8, %v1738_v5 }
 0x356   : > { %v1801_v16 = vpop.f32.mrf.mxu0  ;;  %v1844_v17 = vpop.f32.mrf.mxu1 }
 0x357   : > { %v1851_v18 = vadd.f32 %v1800_v9, %v2382_v6  ;;  %v1853_v25 = vadd.f32 %v1843_v15, %v2387_v10  ;;  %v1802_v26 = vadd.f32 %v1801_v16, %v1738_v5  ;;  %v1845_v27 = vadd.f32 %v1844_v17, %v1738_v5 }
 0x358   : > { %v1803_v28 = vpop.f32.mrf.mxu0  ;;  %v1846_v34 = vpop.f32.mrf.mxu1 }
 0x359   : > { %v1859_v11 = vmax.f32 %v1851_v18, 0.0  ;;  %v1861_v12 = vmax.f32 %v1853_v25, 0.0  ;;  %v1852_v20 = vadd.f32 %v2100_v19, %v1802_v26  ;;  %v1854_v14 = vadd.f32 %v2101_v13, %v1845_v27 }
 0x35a   : > { %v1804_v6 = vadd.f32 %v1803_v28, %v1743_v21  ;;  %v1847_v10 = vadd.f32 %v1846_v34, %v1743_v21  ;;  %v1805_v22 = vpop.f32.mrf.mxu0  ;;  %v1848_v24 = vpop.f32.mrf.mxu1 }
 0x35b   : > { %1867 = vst [vmem:[%s2700_s23] sm:$0xff] %v1859_v11  ;;  %1869 = vst [vmem:[%s2700_s23 + $0x10] sm:$0xff] %v1861_v12  ;;  %v1860_v30 = vmax.f32 %v1852_v20, 0.0  ;;  %v1862_v32 = vmax.f32 %v1854_v14, 0.0  ;;  %v1806_v33 = vadd.f32 %v1805_v22, %v1743_v21  ;;  %v1849_v0 = vadd.f32 %v1848_v24, %v1743_v21 }
 0x35c   : > { %v1855_v31 = vadd.f32 %v2102_v35, %v1804_v6  ;;  %v1857_v23 = vadd.f32 %v2103_v36, %v1847_v10 }
 0x35d   : > { %1868 = vst [vmem:[%s2700_s23 + $0x8] sm:$0xff] %v1860_v30  ;;  %1870 = vst [vmem:[%s2700_s23 + $0x18] sm:$0xff] %v1862_v32  ;;  %v1856_v29 = vadd.f32 %v2104_v42, %v1806_v33  ;;  %v1858_v44 = vadd.f32 %v2105_v43, %v1849_v0 }
 0x35e   : > { %v1863_v45 = vmax.f32 %v1855_v31, 0.0  ;;  %v1865_v46 = vmax.f32 %v1857_v23, 0.0 }
 0x35f   : > { %v1864_v47 = vmax.f32 %v1856_v29, 0.0  ;;  %v1866_v48 = vmax.f32 %v1858_v44, 0.0 }
 0x360   : > { %1871 = vst [vmem:[%s2700_s23 + $0x20] sm:$0xff] %v1863_v45  ;;  %1873 = vst [vmem:[%s2700_s23 + $0x30] sm:$0xff] %v1865_v46 }
 0x361   : > { %1872 = vst [vmem:[%s2700_s23 + $0x28] sm:$0xff] %v1864_v47  ;;  %1874 = vst [vmem:[%s2700_s23 + $0x38] sm:$0xff] %v1866_v48 }
 0x362   : > { %2147 = shalt.err (!%p2144_p10)
}
 0x363   : > { %s2148_s13 = scalar_lea.hbm %s2717_s26, 1024  ;;  %s2152_s23 = scalar_lea.hbm %s2772_s8, 2048 }
 0x364   : > { %p2149_p1 = scmp.ne.s32.totalorder %s2717_s26, %s2148_s13  ;;  %p2153_p0 = scmp.lt.s32.totalorder %s2717_s26, %s2772_s8 }
 0x365   : > { %p2154_p2 = scmp.lt.s32.totalorder %s2152_s23, %s2148_s13 }
 0x366   : > { %p2150_p3 = pnand %p2149_p1, %p2783_p12 }
 0x367   : > { %p2155_p6 = por %p2154_p2, %p2153_p0 }
 0x368   : > { %p2151_p9 = pneg %p2150_p3 }
 0x36a   : > { %p2156_p11 = pnand %p2155_p6, %p2151_p9 }
 0x36c   : > { %2159 = shalt.err (!%p2156_p11)
}
 0x36d   : > { %s2214_s24 = smov 512   ;;  %s2215_s12 = smov 1024  }
 0x36e   : > { %s2216_s19 = smov 32  }
 0x36f   : > { %2038 = dma.vmem_to_hbm [thread:$0]  (%p2783_p12), %s2708_s16, 1024, %s2717_s26, %s1876_s10, %s2214_s24, %s2215_s12, %s2216_s19  }
 0x370 PF: > { %s1904_s25 = sand.u32 1, %s2186_s27   ;;  %p2784_p13 = scmp.ne.s32.totalorder %s2779_s18, 0 }
 0x371   : > { %p2785_p4 = scmp.ge.s32.totalorder %s2198_s30, 2  ;;  %s1905_s20 = scalar_lea.sflag [#allocation4], %s1904_s25 }
 0x373   : > { %p2045_p5 = pnand %p2785_p4, %p2784_p13 }
 0x375   : > { %p2046_p7 = pneg %p2045_p5 }
 0x377   : > { %2181 = dma.done.wait (%p2046_p7), %s1905_s20, 1024  }
 0x378   : > { %2183 = vsyncadd (%p2046_p7), %s1905_s20, 4294966272  ;;  %s2786_s13 = sld [smem:[#allocation8_spill]]  ;;  %p21_p8 = scmp.ge.s32.totalorder %s2287_s11, 4  }
 0x379   : > { %s2787_s27 = smov %s2190_s28  ;;  %s2788_s28 = smov %s2194_s29 }
 0x37a   : > { %s2790_s30 = smov %s2287_s11  ;;  %23 = sbr.rel (!%p21_p8) target bundleno = 5 (0x5), region = 112 }
 0x37e   : > { %s2789_s29 = smov %s2786_s13 }
 0x37f   :  { %1910 = vsyncpa [#allocation3], 1 }
 0x380   :  { %1912 = vsyncpa [#allocation3 + $0x1], 1 }
 0x381   :  { %1913 = vsyncpa [#allocation4], 1 }
 0x382   :  { %1915 = vsyncpa [#allocation4 + $0x1], 1 }

</bundles_post_ra>
